<compile_context>
chip_gen: v5e
topology: v5e:2x2
jax: 0.10.0
libtpu: 0.0.40
codegen_flags: <defaults>
</compile_context>

<pallas_src>
import functools

import jax
import jax.numpy as jnp
from jax.experimental import pallas as pl
from jax.experimental.pallas import tpu as pltpu

PAD = 128          # lane width for the hidden layers (32/64/128 zero-padded)
NUM_LAYERS = 4
TM_MAX = 2048      # max row-tile size for large batches


def _round_up(x, m):
    return ((x + m - 1) // m) * m


def qrdqn_kernel(x_ref, w0_ref, wm_ref, wl_ref, b_ref, bl_ref, out_ref):
    """One row-tile of the whole MLP.

    x_ref  : (TM, num_inputs)   f32   (raw input rows, no padding slab)
    w0_ref : (num_inputs, 128)  bf16  (layer-1 weight, cols zero-padded to 128)
    wm_ref : (2, 128, 128)      bf16  (layers 2-3, zero-padded, pre-transposed)
    wl_ref : (128, out_dim)     bf16  (layer-4 weight, lane-narrow output)
    b_ref  : (3, 128)           f32   (biases of layers 1-3, zero-padded)
    bl_ref : (1, out_dim)       f32   (layer-4 bias)
    out_ref: (TM, out_dim)      f32   (real output columns only)
    """
    # Layer 1: Linear(num_inputs -> 32) + ReLU   (out cols padded to 128)
    h = jnp.dot(x_ref[...].astype(jnp.bfloat16), w0_ref[...],
                preferred_element_type=jnp.float32) + b_ref[0]
    h = jnp.maximum(h, 0.0)
    # Layer 2: Linear(32 -> 64) + ReLU
    h = jnp.dot(h.astype(jnp.bfloat16), wm_ref[0],
                preferred_element_type=jnp.float32) + b_ref[1]
    h = jnp.maximum(h, 0.0)
    # Layer 3: Linear(64 -> 128) + ReLU
    h = jnp.dot(h.astype(jnp.bfloat16), wm_ref[1],
                preferred_element_type=jnp.float32) + b_ref[2]
    h = jnp.maximum(h, 0.0)
    # Layer 4: Linear(128 -> num_actions*num_quants), no activation
    o = jnp.dot(h.astype(jnp.bfloat16), wl_ref[...],
                preferred_element_type=jnp.float32) + bl_ref[...]
    out_ref[...] = o.astype(out_ref.dtype)


def init_params(key, num_inputs, num_actions, num_quants):
    """PyTorch nn.Linear default init (uniform +/- 1/sqrt(fan_in)).
    Weights stored already transposed to (in, out); biases as (out,)."""
    dims = [num_inputs, 32, 64, 128, num_actions * num_quants]
    params = []
    for i in range(NUM_LAYERS):
        fan_in, fan_out = dims[i], dims[i + 1]
        key, kw, kb = jax.random.split(key, 3)
        bound = 1.0 / (fan_in ** 0.5)
        w = jax.random.uniform(kw, (fan_in, fan_out), jnp.float32, -bound, bound)
        b = jax.random.uniform(kb, (fan_out,), jnp.float32, -bound, bound)
        params.append((w, b))
    return params


def pack_params(params, num_inputs, out_dim):
    """Pack parameters into the slabs the kernel expects.

    Returns (w0, w_mid, w_last, b123, b_last):
      w0     (num_inputs, 128)  bf16
      w_mid  (2, 128, 128)      bf16
      w_last (128, out_dim)     bf16
      b123   (3, 128)           f32
      b_last (1, out_dim)       f32
    Padded rows/cols are exactly zero so real outputs are unchanged."""
    (w0, b0), (w1, b1), (w2, b2), (w3, b3) = params
    w0_p = (jnp.zeros((num_inputs, PAD), jnp.float32)
            .at[:, : w0.shape[1]].set(w0).astype(jnp.bfloat16))
    w_mid = jnp.zeros((2, PAD, PAD), jnp.float32)
    w_mid = (w_mid.at[0, : w1.shape[0], : w1.shape[1]].set(w1)
                  .at[1, : w2.shape[0], : w2.shape[1]].set(w2)
                  .astype(jnp.bfloat16))
    w_last = w3.astype(jnp.bfloat16)                      # (128, out_dim)
    b123 = jnp.zeros((3, PAD), jnp.float32)
    b123 = (b123.at[0, : b0.shape[0]].set(b0)
                 .at[1, : b1.shape[0]].set(b1)
                 .at[2, : b2.shape[0]].set(b2))
    b_last = b3.reshape(1, out_dim).astype(jnp.float32)
    return w0_p, w_mid, w_last, b123, b_last


def _choose_tiling(batch):
    """Pick (batch_p, tm).  Small batch -> one tile; large batch -> batch
    rounded to a multiple of 128 and the largest 128-multiple tile <= TM_MAX
    that divides it while leaving >= 2 grid steps (v7x dual-TC)."""
    if batch <= 256:
        batch_p = _round_up(batch, 16)
        return batch_p, batch_p
    batch_p = _round_up(batch, 128)
    cap = min(TM_MAX, batch_p // 2)
    tm = 128
    for cand in range(256, cap + 1, 128):
        if batch_p % cand == 0:
            tm = cand
    return batch_p, tm


@functools.partial(jax.jit, static_argnames=("num_actions", "num_quants"))
def qrdqn_forward(x, w0, w_mid, w_last, b123, b_last, num_actions, num_quants):
    batch, num_inputs = x.shape
    out_dim = num_actions * num_quants

    batch_p, tm = _choose_tiling(batch)
    grid = (batch_p // tm,)

    # Only pad rows (narrow num_inputs-wide array) when the batch needs rounding.
    xp = x if batch_p == batch else jnp.pad(x, ((0, batch_p - batch), (0, 0)))

    flops = 2 * batch_p * (num_inputs * PAD + PAD * PAD + PAD * PAD + PAD * out_dim)
    bytes_accessed = (xp.size * 4 + w0.size * 2 + w_mid.size * 2 + w_last.size * 2
                      + b123.size * 4 + b_last.size * 4 + batch_p * out_dim * 4)

    out_flat = pl.pallas_call(
        qrdqn_kernel,
        out_shape=jax.ShapeDtypeStruct((batch_p, out_dim), jnp.float32),
        grid=grid,
        in_specs=[
            pl.BlockSpec((tm, num_inputs), lambda i: (i, 0)),        # x: row-tiled, narrow
            pl.BlockSpec((num_inputs, PAD), lambda i: (0, 0)),       # W0: resident
            pl.BlockSpec((2, PAD, PAD), lambda i: (0, 0, 0)),        # W1,W2: resident
            pl.BlockSpec((PAD, out_dim), lambda i: (0, 0)),          # W3: resident
            pl.BlockSpec((3, PAD), lambda i: (0, 0)),                # b1..b3: resident
            pl.BlockSpec((1, out_dim), lambda i: (0, 0)),            # b4: resident
        ],
        out_specs=pl.BlockSpec((tm, out_dim), lambda i: (i, 0)),
        compiler_params=pltpu.CompilerParams(
            dimension_semantics=("parallel",)),                      # batch axis
        cost_estimate=pl.CostEstimate(flops=flops, transcendentals=0,
                                      bytes_accessed=bytes_accessed),
    )(xp, w0, w_mid, w_last, b123, b_last)

    if batch_p != batch:
        out_flat = out_flat[:batch]
    return out_flat.reshape(batch, num_actions, num_quants)


# ----------------------------------------------------------------------------
# References for correctness checking
# ----------------------------------------------------------------------------
def qrdqn_forward_ref_f32(x, params, num_actions, num_quants):
    """Pure-f32 reference (exact PyTorch-module semantics)."""
    h = x
    for i, (w, b) in enumerate(params):
        h = h @ w + b
        if i < 3:
            h = jnp.maximum(h, 0.0)
    return h.reshape(x.shape[0], num_actions, num_quants)


def qrdqn_forward_ref_bf16(x, params, num_actions, num_quants):
    """Replicates the kernel math exactly: bf16 matmul inputs, f32 accumulate."""
    h = x.astype(jnp.bfloat16)
    for i, (w, b) in enumerate(params):
        h = jnp.dot(h, w.astype(jnp.bfloat16),
                    preferred_element_type=jnp.float32) + b
        if i < 3:
            h = jnp.maximum(h, 0.0).astype(jnp.bfloat16)
    return h.reshape(x.shape[0], num_actions, num_quants)


if __name__ == "__main__":
    # LunarLander-v2-ish QR-DQN: num_inputs=8, num_actions=4, num_quants=8.
    batch = 32
    num_inputs = 8
    num_actions = 4
    num_quants = 8
    out_dim = num_actions * num_quants

    key = jax.random.PRNGKey(0)
    key, kx = jax.random.split(key)
    x = jax.random.normal(kx, (batch, num_inputs), dtype=jnp.float32)

    params = init_params(key, num_inputs, num_actions, num_quants)
    packed = pack_params(params, num_inputs, out_dim)

    out = qrdqn_forward(x, *packed, num_actions=num_actions, num_quants=num_quants)
    out = jax.block_until_ready(out)
    assert out.shape == (batch, num_actions, num_quants)

    # Tight check vs. a reference that matches the kernel's bf16-matmul math.
    ref_bf16 = qrdqn_forward_ref_bf16(x, params, num_actions, num_quants)
    assert jnp.allclose(out, ref_bf16, atol=1e-3, rtol=1e-3), \
        "mismatch vs bf16-matmul reference"

    # Sanity check vs. the exact f32 PyTorch semantics (bf16-rounding tolerance).
    ref_f32 = qrdqn_forward_ref_f32(x, params, num_actions, num_quants)
    assert jnp.allclose(out, ref_f32, atol=0.1, rtol=0.1), \
        "mismatch vs f32 reference beyond bf16 tolerance"

    # Exercise the multi-tile grid + padded-batch path (520 -> 640 rows, grid=(5,)).
    key, kx2 = jax.random.split(key)
    x_big = jax.random.normal(kx2, (520, num_inputs), dtype=jnp.float32)
    out_big = jax.block_until_ready(
        qrdqn_forward(x_big, *packed, num_actions=num_actions, num_quants=num_quants))
    ref_big = qrdqn_forward_ref_bf16(x_big, params, num_actions, num_quants)
    assert out_big.shape == (520, num_actions, num_quants)
    assert jnp.allclose(out_big, ref_big, atol=1e-3, rtol=1e-3), \
        "mismatch vs reference on multi-tile grid"

    print("KERNEL_OK")
</pallas_src>

<mosaic_0001>
module attributes {stable_mosaic.version = 11 : i64} {
  func.func @qrdqn_kernel(%arg0: i32, %arg1: memref<32x8xf32, #tpu.memory_space<vmem>>, %arg2: memref<8x128xbf16, #tpu.memory_space<vmem>>, %arg3: memref<2x128x128xbf16, #tpu.memory_space<vmem>>, %arg4: memref<128x32xbf16, #tpu.memory_space<vmem>>, %arg5: memref<3x128xf32, #tpu.memory_space<vmem>>, %arg6: memref<1x32xf32, #tpu.memory_space<vmem>>, %arg7: memref<32x32xf32, #tpu.memory_space<vmem>>) attributes {dimension_semantics = [#tpu.dimension_semantics<parallel>], iteration_bounds = array<i64: 1>, scalar_prefetch = 0 : i64, scratch_operands = 0 : i64, tpu.core_type = #tpu.core_type<tc>, window_params = [{transform_indices = @transform_0, window_bounds = array<i64: 32, 8>}, {pipeline_mode = #tpu.pipeline_mode<synchronous>, transform_indices = @transform_1, window_bounds = array<i64: 8, 128>}, {pipeline_mode = #tpu.pipeline_mode<synchronous>, transform_indices = @transform_2, window_bounds = array<i64: 2, 128, 128>}, {pipeline_mode = #tpu.pipeline_mode<synchronous>, transform_indices = @transform_3, window_bounds = array<i64: 128, 32>}, {pipeline_mode = #tpu.pipeline_mode<synchronous>, transform_indices = @transform_4, window_bounds = array<i64: 3, 128>}, {pipeline_mode = #tpu.pipeline_mode<synchronous>, transform_indices = @transform_5, window_bounds = array<i64: 1, 32>}, {transform_indices = @transform_6, window_bounds = array<i64: 32, 32>}]} {
    %c0 = arith.constant 0 : index
    %c0_0 = arith.constant 0 : index
    %0 = vector.load %arg1[%c0, %c0_0] : memref<32x8xf32, #tpu.memory_space<vmem>>, vector<32x8xf32>
    %1 = arith.truncf %0 : vector<32x8xf32> to vector<32x8xbf16>
    %c0_1 = arith.constant 0 : index
    %c0_2 = arith.constant 0 : index
    %2 = vector.load %arg2[%c0_1, %c0_2] : memref<8x128xbf16, #tpu.memory_space<vmem>>, vector<8x128xbf16>
    %cst = arith.constant dense<0.000000e+00> : vector<32x128xf32>
    %3 = tpu.matmul %1, %2, %cst {dimension_numbers = #tpu.dot_dimension_numbers<[1], [0], [0], [1], [0, 0, 1, 1], [], []>} : vector<32x8xbf16>, vector<8x128xbf16>, vector<32x128xf32> -> vector<32x128xf32>
    %c0_3 = arith.constant 0 : index
    %c0_4 = arith.constant 0 : index
    %4 = vector.load %arg5[%c0_3, %c0_4] : memref<3x128xf32, #tpu.memory_space<vmem>>, vector<1x128xf32>
    %5 = vector.shape_cast %4 : vector<1x128xf32> to vector<128xf32>
    %6 = vector.shape_cast %5 : vector<128xf32> to vector<1x128xf32>
    %7 = vector.broadcast %6 : vector<1x128xf32> to vector<32x128xf32>
    %8 = arith.addf %3, %7 : vector<32x128xf32>
    %cst_5 = arith.constant 0.000000e+00 : f32
    %9 = vector.broadcast %cst_5 : f32 to vector<32x128xf32>
    %10 = arith.maximumf %8, %9 : vector<32x128xf32>
    %11 = arith.truncf %10 : vector<32x128xf32> to vector<32x128xbf16>
    %c0_6 = arith.constant 0 : index
    %c0_7 = arith.constant 0 : index
    %c0_8 = arith.constant 0 : index
    %12 = vector.load %arg3[%c0_6, %c0_7, %c0_8] : memref<2x128x128xbf16, #tpu.memory_space<vmem>>, vector<1x128x128xbf16>
    %13 = vector.shape_cast %12 : vector<1x128x128xbf16> to vector<128x128xbf16>
    %cst_9 = arith.constant dense<0.000000e+00> : vector<32x128xf32>
    %14 = tpu.matmul %11, %13, %cst_9 {dimension_numbers = #tpu.dot_dimension_numbers<[1], [0], [0], [1], [0, 0, 1, 1], [], []>} : vector<32x128xbf16>, vector<128x128xbf16>, vector<32x128xf32> -> vector<32x128xf32>
    %c1 = arith.constant 1 : index
    %c0_10 = arith.constant 0 : index
    %15 = vector.load %arg5[%c1, %c0_10] : memref<3x128xf32, #tpu.memory_space<vmem>>, vector<1x128xf32>
    %16 = vector.shape_cast %15 : vector<1x128xf32> to vector<128xf32>
    %17 = vector.shape_cast %16 : vector<128xf32> to vector<1x128xf32>
    %18 = vector.broadcast %17 : vector<1x128xf32> to vector<32x128xf32>
    %19 = arith.addf %14, %18 : vector<32x128xf32>
    %cst_11 = arith.constant 0.000000e+00 : f32
    %20 = vector.broadcast %cst_11 : f32 to vector<32x128xf32>
    %21 = arith.maximumf %19, %20 : vector<32x128xf32>
    %22 = arith.truncf %21 : vector<32x128xf32> to vector<32x128xbf16>
    %c1_12 = arith.constant 1 : index
    %c0_13 = arith.constant 0 : index
    %c0_14 = arith.constant 0 : index
    %23 = vector.load %arg3[%c1_12, %c0_13, %c0_14] : memref<2x128x128xbf16, #tpu.memory_space<vmem>>, vector<1x128x128xbf16>
    %24 = vector.shape_cast %23 : vector<1x128x128xbf16> to vector<128x128xbf16>
    %cst_15 = arith.constant dense<0.000000e+00> : vector<32x128xf32>
    %25 = tpu.matmul %22, %24, %cst_15 {dimension_numbers = #tpu.dot_dimension_numbers<[1], [0], [0], [1], [0, 0, 1, 1], [], []>} : vector<32x128xbf16>, vector<128x128xbf16>, vector<32x128xf32> -> vector<32x128xf32>
    %c2 = arith.constant 2 : index
    %c0_16 = arith.constant 0 : index
    %26 = vector.load %arg5[%c2, %c0_16] : memref<3x128xf32, #tpu.memory_space<vmem>>, vector<1x128xf32>
    %27 = vector.shape_cast %26 : vector<1x128xf32> to vector<128xf32>
    %28 = vector.shape_cast %27 : vector<128xf32> to vector<1x128xf32>
    %29 = vector.broadcast %28 : vector<1x128xf32> to vector<32x128xf32>
    %30 = arith.addf %25, %29 : vector<32x128xf32>
    %cst_17 = arith.constant 0.000000e+00 : f32
    %31 = vector.broadcast %cst_17 : f32 to vector<32x128xf32>
    %32 = arith.maximumf %30, %31 : vector<32x128xf32>
    %33 = arith.truncf %32 : vector<32x128xf32> to vector<32x128xbf16>
    %c0_18 = arith.constant 0 : index
    %c0_19 = arith.constant 0 : index
    %34 = vector.load %arg4[%c0_18, %c0_19] : memref<128x32xbf16, #tpu.memory_space<vmem>>, vector<128x32xbf16>
    %cst_20 = arith.constant dense<0.000000e+00> : vector<32x32xf32>
    %35 = tpu.matmul %33, %34, %cst_20 {dimension_numbers = #tpu.dot_dimension_numbers<[1], [0], [0], [1], [0, 0, 1, 1], [], []>} : vector<32x128xbf16>, vector<128x32xbf16>, vector<32x32xf32> -> vector<32x32xf32>
    %c0_21 = arith.constant 0 : index
    %c0_22 = arith.constant 0 : index
    %36 = vector.load %arg6[%c0_21, %c0_22] : memref<1x32xf32, #tpu.memory_space<vmem>>, vector<1x32xf32>
    %37 = vector.broadcast %36 : vector<1x32xf32> to vector<32x32xf32>
    %38 = arith.addf %35, %37 : vector<32x32xf32>
    %c0_23 = arith.constant 0 : index
    %c0_24 = arith.constant 0 : index
    %39 = vector.load %arg7[%c0_23, %c0_24] : memref<32x32xf32, #tpu.memory_space<vmem>>, vector<32x32xf32>
    tpu.vector_store %arg7[%c0_23, %c0_24], %38 {strides = array<i32>} : memref<32x32xf32, #tpu.memory_space<vmem>>, vector<32x32xf32>,
    return
  }
  func.func @transform_0(%arg0: i32) -> (i32, i32) {
    %c0_i32 = arith.constant 0 : i32
    %c0_i32_0 = arith.constant 0 : i32
    return %arg0, %c0_i32 : i32, i32
  }
  func.func @transform_1(%arg0: i32) -> (i32, i32) {
    %c0_i32 = arith.constant 0 : i32
    %c0_i32_0 = arith.constant 0 : i32
    %c0_i32_1 = arith.constant 0 : i32
    return %c0_i32, %c0_i32_0 : i32, i32
  }
  func.func @transform_2(%arg0: i32) -> (i32, i32, i32) {
    %c0_i32 = arith.constant 0 : i32
    %c0_i32_0 = arith.constant 0 : i32
    %c0_i32_1 = arith.constant 0 : i32
    %c0_i32_2 = arith.constant 0 : i32
    return %c0_i32, %c0_i32_0, %c0_i32_1 : i32, i32, i32
  }
  func.func @transform_3(%arg0: i32) -> (i32, i32) {
    %c0_i32 = arith.constant 0 : i32
    %c0_i32_0 = arith.constant 0 : i32
    %c0_i32_1 = arith.constant 0 : i32
    return %c0_i32, %c0_i32_0 : i32, i32
  }
  func.func @transform_4(%arg0: i32) -> (i32, i32) {
    %c0_i32 = arith.constant 0 : i32
    %c0_i32_0 = arith.constant 0 : i32
    %c0_i32_1 = arith.constant 0 : i32
    return %c0_i32, %c0_i32_0 : i32, i32
  }
  func.func @transform_5(%arg0: i32) -> (i32, i32) {
    %c0_i32 = arith.constant 0 : i32
    %c0_i32_0 = arith.constant 0 : i32
    %c0_i32_1 = arith.constant 0 : i32
    return %c0_i32, %c0_i32_0 : i32, i32
  }
  func.func @transform_6(%arg0: i32) -> (i32, i32) {
    %c0_i32 = arith.constant 0 : i32
    %c0_i32_0 = arith.constant 0 : i32
    return %arg0, %c0_i32 : i32, i32
  }
}

</mosaic_0001>

<bundles_post_ra>
// kernel: qrdqn_forward.1
= control target key start
LH: loop header
LB: loop body
LE: loop exit
PB: predicated region body
PF: predicated region fallthrough
CT: control target
= control target key end

     0   :  { %11 = vsyncpa [#allocation3], 0  ;;  %s528_s24 = smov [#allocation2]   ;;  %s529_s26 = smov 64   ;;  %s634_s0 = inlined_call_operand.vmem [shape: f32[32,8], index: 0, kind: input, shape index: {}]   ;;  %s635_s1 = inlined_call_operand.vmem [shape: bf16[8,128], index: 1, kind: input, shape index: {}]   ;;  %s636_s2 = inlined_call_operand.hbm [shape: bf16[2,128,128], index: 2, kind: input, shape index: {}]   ;;  %s637_s3 = inlined_call_operand.vmem [shape: bf16[128,32], index: 3, kind: input, shape index: {}]   ;;  %s638_s4 = inlined_call_operand.vmem [shape: f32[3,128], index: 4, kind: input, shape index: {}]   ;;  %s639_s5 = inlined_call_operand.vmem [shape: f32[1,32], index: 5, kind: input, shape index: {}]   ;;  %s640_s6 = inlined_call_operand.vmem [shape: f32[32,32], index: 6, kind: output, shape index: {}]  }
   0x1   :  { %s20_s23 = sshll.u32 %s636_s2, 4  ;;  %s22_s25 = sshll.u32 %s528_s24, 4  ;;  %s21_s23 = int_to_ptr.hbm [resolvable:$true] %s20_s23  ;;  %s23_s25 = int_to_ptr.vmem [resolvable:$true] %s22_s25 }
   0x2   :  { %s530_s27 = smov 4  }
   0x3   :  { %28 = dma.hbm_to_vmem [thread:$0]  %s21_s23, 2048, %s23_s25, [#allocation3], %s529_s26, %s529_s26, %s530_s27  }
   0x4   :  { %526 = dma.done.wait [#allocation3], 2048  }
   0x5   :  { %527 = vsyncadd [#allocation3], 4294965248  ;;  %vm56_vm0 = vcmask 1043456   ;;  %v46_v0 = vld [vmem:[%s635_s1] sm:$0xf]  ;;  %v41_v2 = vld [vmem:[%s634_s0 + $0x8] sm:$0xff] }
   0x6   :  { %v40_v1 = vld [vmem:[%s634_s0] sm:$0xff]  ;;  %v58_v3 = vsel %vm56_vm0, %v46_v0, 0  ;;  %v470_v5 = vld [vmem:[#allocation2 + $0x38] sm:$0xff]  ;;  %vm49_vm1 = vcmask 64512   ;;  %v469_v6 = vld [vmem:[#allocation2 + $0x30] sm:$0xff]  ;;  %vm355_vm2 = vcmask 261120  }
   0x7   :  { %v44_v4 = vpack.c.bf16 %v41_v2, %v40_v1  ;;  %67 = vmatpush.bf16.msra.mxu0 %v58_v3  ;;  %487 = vmatpush.bf16.msra.mxu1 %v470_v5  ;;  %v468_v7 = vld [vmem:[#allocation2 + $0x28] sm:$0xff]  ;;  %v467_v8 = vld [vmem:[#allocation2 + $0x20] sm:$0xff]  ;;  %v42_v9 = vld [vmem:[%s634_s0 + $0x10] sm:$0xff] }
   0x8   :  { %v43_v10 = vld [vmem:[%s634_s0 + $0x18] sm:$0xff]  ;;  %v465_v13 = vld [vmem:[#allocation2 + $0x10] sm:$0xff]  ;;  %v464_v14 = vld [vmem:[#allocation2 + $0x8] sm:$0xff] }
   0x9   :  { %v466_v11 = vld [vmem:[#allocation2 + $0x18] sm:$0xff]  ;;  %v45_v12 = vpack.c.bf16 %v43_v10, %v42_v9  ;;  %v463_v15 = vld [vmem:[#allocation2] sm:$0xff]  ;;  %v477_v18 = vld [vmem:[#allocation2 + $0x70] sm:$0xff] }
   0xa   :  { %365 = vmatmul.msk.bf16.vlgmr.msra.gmra.mxu0 %vm49_vm1, %v44_v4  ;;  %v478_v16 = vld [vmem:[#allocation2 + $0x78] sm:$0xff]  ;;  %v498_v19 = vld [vmem:[%s638_s4] ss:$0 sm:$0xff]  ;;  %v476_v20 = vld [vmem:[#allocation2 + $0x68] sm:$0xff] }
   0xb   :  { %151 = vmatpush.bf16.msrb.mxu0 %v470_v5  ;;  %488 = vmatpush.bf16.msra.mxu1 %v469_v6  ;;  %v475_v24 = vld [vmem:[#allocation2 + $0x60] sm:$0xff]  ;;  %v474_v35 = vld [vmem:[#allocation2 + $0x58] sm:$0xff]  ;;  %v473_v36 = vld [vmem:[#allocation2 + $0x50] sm:$0xff] }
   0xc   :  { %243 = vmatpush.bf16.msra.mxu2 %v478_v16  ;;  %v472_v37 = vld [vmem:[#allocation2 + $0x48] sm:$0xff]  ;;  %v471_v38 = vld [vmem:[#allocation2 + $0x40] sm:$0xff]  ;;  %v486_v39 = vld [vmem:[%s637_s3 + $0x38] sm:$0xff] }
   0xd   :  { %336 = vmatpush.bf16.msra.mxu3 %v486_v39  ;;  %v485_v41 = vld [vmem:[%s637_s3 + $0x30] sm:$0xff]  ;;  %v499_v42 = vld [vmem:[%s638_s4 + $0x1] ss:$0 sm:$0xff]  ;;  %v484_v43 = vld [vmem:[%s637_s3 + $0x28] sm:$0xff] }
   0xe   :  { %v483_v47 = vld [vmem:[%s637_s3 + $0x20] sm:$0xff]  ;;  %v482_v58 = vld [vmem:[%s637_s3 + $0x18] sm:$0xff]  ;;  %v481_v59 = vld [vmem:[%s637_s3 + $0x10] sm:$0xff] }
   0xf   :  { %152 = vmatpush.bf16.msrb.mxu0 %v469_v6  ;;  %489 = vmatpush.bf16.msra.mxu1 %v468_v7  ;;  %v480_v60 = vld [vmem:[%s637_s3 + $0x8] sm:$0xff]  ;;  %v479_v61 = vld [vmem:[%s637_s3] sm:$0xff] }
  0x10   :  { %244 = vmatpush.bf16.msra.mxu2 %v477_v18  ;;  %v500_v63 = vld [vmem:[%s638_s4 + $0x2] ss:$0 sm:$0xff] }
  0x11   :  { %337 = vmatpush.bf16.msra.mxu3 %v485_v41 }
  0x13   :  { %153 = vmatpush.bf16.msrb.mxu0 %v468_v7  ;;  %490 = vmatpush.bf16.msra.mxu1 %v467_v8 }
  0x14   :  { %245 = vmatpush.bf16.msra.mxu2 %v476_v20 }
  0x15   :  { %338 = vmatpush.bf16.msra.mxu3 %v484_v43 }
  0x17   :  { %154 = vmatpush.bf16.msrb.mxu0 %v467_v8  ;;  %491 = vmatpush.bf16.msra.mxu1 %v466_v11 }
  0x18   :  { %246 = vmatpush.bf16.msra.mxu2 %v475_v24 }
  0x19   :  { %339 = vmatpush.bf16.msra.mxu3 %v483_v47 }
  0x1a   :  { %366 = vmatmul.msk.bf16.gmra.mxu0 %vm49_vm1, %v45_v12 }
  0x1b   :  { %155 = vmatpush.bf16.msrb.mxu0 %v466_v11  ;;  %492 = vmatpush.bf16.msra.mxu1 %v465_v13 }
  0x1c   :  { %247 = vmatpush.bf16.msra.mxu2 %v474_v35 }
  0x1d   :  { %340 = vmatpush.bf16.msra.mxu3 %v482_v58 }
  0x1f   :  { %156 = vmatpush.bf16.msrb.mxu0 %v465_v13  ;;  %493 = vmatpush.bf16.msra.mxu1 %v464_v14  ;;  %v501_v13 = vld [vmem:[%s639_s5] ss:$0 sm:$0xff] }
  0x20   :  { %248 = vmatpush.bf16.msra.mxu2 %v473_v36 }
  0x21   :  { %341 = vmatpush.bf16.msra.mxu3 %v481_v59 }
  0x23   :  { %157 = vmatpush.bf16.msrb.mxu0 %v464_v14  ;;  %494 = vmatpush.bf16.msra.mxu1 %v463_v15 }
  0x24   :  { %249 = vmatpush.bf16.msra.mxu2 %v472_v37 }
  0x25   :  { %342 = vmatpush.bf16.msra.mxu3 %v480_v60 }
  0x27   :  { %158 = vmatpush.bf16.msrb.mxu0 %v463_v15 }
  0x28   :  { %250 = vmatpush.bf16.msra.mxu2 %v471_v38 }
  0x29   :  { %343 = vmatpush.bf16.msra.mxu3 %v479_v61 }
  0x87   :  { %v69_v17 = vpop.f32.mrf.mxu0 }
  0x88   :  { %v70_v21 = vadd.f32 %v498_v19, %v69_v17 }
  0x8a   :  { %v79_v25 = vmax.f32 %v70_v21, 0.0 }
  0x8f   :  { %v71_v22 = vpop.f32.mrf.mxu0 }
  0x90   :  { %v72_v23 = vadd.f32 %v498_v19, %v71_v22 }
  0x92   :  { %v80_v26 = vmax.f32 %v72_v23, 0.0 }
  0x94   :  { %v83_v27 = vpack.c.bf16 %v80_v26, %v79_v25 }
  0x96   :  { %159 = vmatmul.bf16.vlgmr.msrb.gmra.mxu0 %v83_v27 }
  0x97   :  { %v74_v28 = vpop.f32.mrf.mxu0 }
  0x98   :  { %v75_v29 = vadd.f32 %v498_v19, %v74_v28 }
  0x9a   :  { %v81_v32 = vmax.f32 %v75_v29, 0.0 }
  0x9f   :  { %v76_v30 = vpop.f32.mrf.mxu0 }
  0xa0   :  { %v77_v31 = vadd.f32 %v498_v19, %v76_v30 }
  0xa2   :  { %v82_v33 = vmax.f32 %v77_v31, 0.0 }
  0xa4   :  { %v84_v34 = vpack.c.bf16 %v82_v33, %v81_v32 }
  0xa6   :  { %164 = vmatmul.bf16.vlgmr.msra.gmra.mxu1 %v84_v34 }
 0x113   :  { %v160_v40 = vpop.f32.mrf.mxu0 }
 0x114   :  { %v161_v44 = vadd.f32 %v499_v42, %v160_v40 }
 0x116   :  { %v170_v48 = vmax.f32 %v161_v44, 0.0 }
 0x11b   :  { %v162_v45 = vpop.f32.mrf.mxu0 }
 0x11c   :  { %v163_v46 = vadd.f32 %v499_v42, %v162_v45 }
 0x11e   :  { %v171_v49 = vmax.f32 %v163_v46, 0.0 }
 0x120   :  { %v174_v50 = vpack.c.bf16 %v171_v49, %v170_v48 }
 0x122   :  { %251 = vmatmul.bf16.vlgmr.msra.gmra.mxu2 %v174_v50 }
 0x123   :  { %v165_v51 = vpop.f32.mrf.mxu1 }
 0x124   :  { %v166_v52 = vadd.f32 %v499_v42, %v165_v51 }
 0x126   :  { %v172_v55 = vmax.f32 %v166_v52, 0.0 }
 0x12b   :  { %v167_v53 = vpop.f32.mrf.mxu1 }
 0x12c   :  { %v168_v54 = vadd.f32 %v499_v42, %v167_v53 }
 0x12e   :  { %v173_v56 = vmax.f32 %v168_v54, 0.0 }
 0x130   :  { %v175_v57 = vpack.c.bf16 %v173_v56, %v172_v55 }
 0x132   :  { %256 = vmatmul.bf16.gmra.mxu2 %v175_v57 }
 0x1a5   :  { %v252_v62 = vpop.f32.mrf.mxu2 }
 0x1a6   :  { %v253_v0 = vadd.f32 %v500_v63, %v252_v62 }
 0x1a8   :  { %v262_v3 = vmax.f32 %v253_v0, 0.0 }
 0x1ad   :  { %v254_v1 = vpop.f32.mrf.mxu2 }
 0x1ae   :  { %v255_v2 = vadd.f32 %v500_v63, %v254_v1 }
 0x1b0   :  { %v263_v4 = vmax.f32 %v255_v2, 0.0 }
 0x1b2   :  { %v266_v5 = vpack.c.bf16 %v263_v4, %v262_v3 }
 0x1b4   :  { %344 = vmatmul.bf16.vlgmr.msra.gmra.mxu3 %v266_v5 }
 0x1b5   :  { %v257_v6 = vpop.f32.mrf.mxu2 }
 0x1b6   :  { %v258_v7 = vadd.f32 %v500_v63, %v257_v6 }
 0x1b8   :  { %v264_v10 = vmax.f32 %v258_v7, 0.0 }
 0x1bd   :  { %v259_v8 = vpop.f32.mrf.mxu2 }
 0x1be   :  { %v260_v9 = vadd.f32 %v500_v63, %v259_v8 }
 0x1c0   :  { %v265_v11 = vmax.f32 %v260_v9, 0.0 }
 0x1c2   :  { %v267_v12 = vpack.c.bf16 %v265_v11, %v264_v10 }
 0x1c4   :  { %349 = vmatmul.bf16.gmra.mxu3 %v267_v12 }
 0x237   :  { %v345_v14 = vpop.f32.mrf.mxu3 }
 0x238   :  { %v346_v15 = vadd.f32 %v501_v13, %v345_v14 }
 0x23a   :  { %356 = vst.msk [vmem:[%s640_s6] sm:$0xff] %vm355_vm2, %v346_v15 }
 0x23f   :  { %v347_v16 = vpop.f32.mrf.mxu3 }
 0x240   :  { %v348_v17 = vadd.f32 %v501_v13, %v347_v16 }
 0x242   :  { %357 = vst.msk [vmem:[%s640_s6 + $0x8] sm:$0xff] %vm355_vm2, %v348_v17 }
 0x247   :  { %v350_v18 = vpop.f32.mrf.mxu3 }
 0x248   :  { %v351_v19 = vadd.f32 %v501_v13, %v350_v18 }
 0x24a   :  { %358 = vst.msk [vmem:[%s640_s6 + $0x10] sm:$0xff] %vm355_vm2, %v351_v19 }
 0x24f   :  { %v352_v20 = vpop.f32.mrf.mxu3 }
 0x250   :  { %v353_v21 = vadd.f32 %v501_v13, %v352_v20 }
 0x252   :  { %359 = vst.msk [vmem:[%s640_s6 + $0x18] sm:$0xff] %vm355_vm2, %v353_v21 }
 0x253   :  { %364 = vsyncpa [#allocation3], 1 }

</bundles_post_ra>
